<compile_context>
chip_gen: v6e
topology: v6e:2x2x1
jax: 0.10.0
libtpu: 0.0.40
codegen_flags: <defaults>
</compile_context>

<pallas_src>
import jax
import jax.numpy as jnp
import numpy as np
from jax.experimental import pallas as pl
from jax.experimental.pallas import tpu as pltpu

INPUT_SIZE = 256
HIDDEN_SIZE = 64
HP = 128           # hidden padded to full lane width
GP = 4 * HP        # padded gate width: i, f, g, o each get a full 128-lane block

# Packed parameter buffer P1, lane width 128: [W1_t | W2_t | b1 | b2 | pad]
_W1_OFF = 0
_W2_OFF = _W1_OFF + INPUT_SIZE            # 256
_B1_OFF = _W2_OFF + HP                    # 384
_B2_OFF = _B1_OFF + 1                     # 385
_P1_ROWS = ((_B2_OFF + 1 + 7) // 8) * 8   # 392

# Packed parameter buffer P2, lane width 512: [W_ih_t ; W_hh_t ; b_gates | pad]
_WIH_OFF = 0
_WHH_OFF = HP                             # 128
_BG_OFF = 2 * HP                          # 256
_P2_ROWS = ((_BG_OFF + 1 + 7) // 8) * 8   # 264

_TB_MAX = 16       # max timesteps per chunk (statically unrolled inside the kernel)


def _round_up(x, m):
    return ((x + m - 1) // m) * m


# ----------------------------------------------------------------------------
# Fused sequence kernel (factory closes over static TB / T / n_chunks).
# ----------------------------------------------------------------------------
def _make_seq_kernel(TB, T_total, n_chunks):
    def kernel(x_ref, state0_ref, p1_ref, p2_ref,
               ys_ref, state_out_ref, carry_ref, hbuf_ref):
        # VMEM-resident packed parameters (constant index_map -> loaded once).
        w1 = p1_ref[_W1_OFF:_W1_OFF + INPUT_SIZE, :]        # (256, 128)
        w2 = p1_ref[_W2_OFF:_W2_OFF + HP, :]                # (128, 128)
        b1 = p1_ref[_B1_OFF:_B1_OFF + 1, :]                 # (1, 128)
        b2 = p1_ref[_B2_OFF:_B2_OFF + 1, :]                 # (1, 128)
        w_ih = p2_ref[_WIH_OFF:_WIH_OFF + HP, :]            # (128, 512)
        w_hh = p2_ref[_WHH_OFF:_WHH_OFF + HP, :]            # (128, 512)
        b_g = p2_ref[_BG_OFF:_BG_OFF + 1, :]                # (1, 512)

        chunk = pl.program_id(0)

        @pl.when(chunk == 0)
        def _():
            carry_ref[...] = state0_ref[...]

        # ---- batched non-recurrent phase (hoisted out of the recurrence) ----
        # fc1 + ReLU over the whole time block.  nn.Dropout is identity at inference.
        h_in = jnp.maximum(
            jnp.dot(x_ref[...], w1, preferred_element_type=jnp.float32) + b1, 0.0)
        # Input-gate contribution for every timestep in one MXU pass.
        pre_gates = jnp.dot(h_in, w_ih, preferred_element_type=jnp.float32) + b_g

        # ---- recurrence: h/c carried as values (vregs) inside the chunk ----
        h = carry_ref[0:1, :]
        c = carry_ref[1:2, :]

        for t in range(TB):
            if n_chunks == 1 and t >= T_total:
                # Padded timestep of a single-chunk call: skip all compute.
                hbuf_ref[t:t + 1, :] = h
                continue

            g = pre_gates[t:t + 1, :] + jnp.dot(
                h, w_hh, preferred_element_type=jnp.float32)

            # PyTorch gate order i, f, g, o -- each in its own 128-lane block.
            i_g = jax.nn.sigmoid(g[:, 0 * HP:1 * HP])
            f_g = jax.nn.sigmoid(g[:, 1 * HP:2 * HP])
            g_g = jnp.tanh(g[:, 2 * HP:3 * HP])
            o_g = jax.nn.sigmoid(g[:, 3 * HP:4 * HP])

            # Padded lanes stay exactly zero: i=f=o=0.5, g=0, c_prev=0 -> c_new=h_new=0.
            c_new = f_g * c + i_g * g_g
            h_new = o_g * jnp.tanh(c_new)

            if n_chunks == 1:
                h, c = h_new, c_new
            else:
                valid = (chunk * TB + t) < T_total
                h = jnp.where(valid, h_new, h)
                c = jnp.where(valid, c_new, c)

            hbuf_ref[t:t + 1, :] = h

        carry_ref[0:1, :] = h
        carry_ref[1:2, :] = c

        # ---- batched fc2 over the whole time block (lane-dense store) ----
        ys_ref[...] = jnp.dot(hbuf_ref[...], w2,
                              preferred_element_type=jnp.float32) + b2

        @pl.when(chunk == pl.num_programs(0) - 1)
        def _():
            state_out_ref[0:1, :] = h
            state_out_ref[1:2, :] = c

    return kernel


# ----------------------------------------------------------------------------
# Parameter construction / packing
# ----------------------------------------------------------------------------
def init_raw_params(key, input_size=INPUT_SIZE, hidden_size=HIDDEN_SIZE):
    """Deterministic PyTorch-style uniform init (synthetic weights)."""
    ks = jax.random.split(key, 8)
    s1 = 1.0 / np.sqrt(input_size)
    sh = 1.0 / np.sqrt(hidden_size)
    return {
        "w1": jax.random.uniform(ks[0], (hidden_size, input_size), jnp.float32, -s1, s1),
        "b1": jax.random.uniform(ks[1], (hidden_size,), jnp.float32, -s1, s1),
        "w_ih": jax.random.uniform(ks[2], (4 * hidden_size, hidden_size), jnp.float32, -sh, sh),
        "w_hh": jax.random.uniform(ks[3], (4 * hidden_size, hidden_size), jnp.float32, -sh, sh),
        "b_ih": jax.random.uniform(ks[4], (4 * hidden_size,), jnp.float32, -sh, sh),
        "b_hh": jax.random.uniform(ks[5], (4 * hidden_size,), jnp.float32, -sh, sh),
        "w2": jax.random.uniform(ks[6], (2, hidden_size), jnp.float32, -sh, sh),
        "b2": jax.random.uniform(ks[7], (2,), jnp.float32, -sh, sh),
    }


def pack_params(raw, hidden_size=HIDDEN_SIZE):
    """Pack all weights/biases into two lane-aligned, zero-padded f32 buffers.

    The zero padding of columns/rows >= hidden_size is load-bearing: it keeps the
    padded lanes of h/c exactly zero across timesteps (see kernel comment)."""
    H = hidden_size

    p1 = np.zeros((_P1_ROWS, HP), np.float32)
    p1[_W1_OFF:_W1_OFF + INPUT_SIZE, :H] = np.asarray(raw["w1"]).T          # (256, 64)
    p1[_W2_OFF:_W2_OFF + H, :2] = np.asarray(raw["w2"]).T                   # (64, 2)
    p1[_B1_OFF, :H] = np.asarray(raw["b1"])
    p1[_B2_OFF, :2] = np.asarray(raw["b2"])

    p2 = np.zeros((_P2_ROWS, GP), np.float32)
    w_ih_t = np.asarray(raw["w_ih"]).T    # (64, 256)
    w_hh_t = np.asarray(raw["w_hh"]).T    # (64, 256)
    bg = np.asarray(raw["b_ih"]) + np.asarray(raw["b_hh"])
    for k in range(4):                    # spread each gate into its own 128-lane block
        p2[_WIH_OFF:_WIH_OFF + H, k * HP:k * HP + H] = w_ih_t[:, k * H:(k + 1) * H]
        p2[_WHH_OFF:_WHH_OFF + H, k * HP:k * HP + H] = w_hh_t[:, k * H:(k + 1) * H]
        p2[_BG_OFF, k * HP:k * HP + H] = bg[k * H:(k + 1) * H]

    return {"p1": jnp.asarray(p1), "p2": jnp.asarray(p2)}


def _pack_state(hidden, hidden_size=HIDDEN_SIZE):
    # Padded lanes (hidden_size..127) MUST be zero for h/c correctness across steps.
    if hidden is None:
        return jnp.zeros((2, HP), jnp.float32)        # reset_state()
    h0 = jnp.asarray(hidden[0], jnp.float32).reshape(hidden_size)
    c0 = jnp.asarray(hidden[1], jnp.float32).reshape(hidden_size)
    st = jnp.zeros((2, HP), jnp.float32)
    return st.at[0, :hidden_size].set(h0).at[1, :hidden_size].set(c0)


# ----------------------------------------------------------------------------
# Wrappers
# ----------------------------------------------------------------------------
def time_action_predict_sequence(xs, params, hidden=None, hidden_size=HIDDEN_SIZE):
    """Fused T-step variant (the module applied per-timestep).

    One pallas_call with a chunked grid; packed weights stay VMEM-resident
    (constant index_map), h/c carried in vregs within a chunk and in a tiny
    VMEM scratch across chunks.  Returns (ys[T,2], (h_n, c_n))."""
    T = xs.shape[0]
    H = hidden_size
    state0 = _pack_state(hidden, H)

    Tp = _round_up(T, 8)
    if Tp <= _TB_MAX:
        TB = Tp
    else:
        TB = _TB_MAX
        Tp = _round_up(T, TB)
    n_chunks = Tp // TB

    xs_p = xs.astype(jnp.float32)
    if Tp != T:
        xs_p = jnp.pad(xs_p, ((0, Tp - T), (0, 0)))

    grid_spec = pltpu.PrefetchScalarGridSpec(
        num_scalar_prefetch=0,
        grid=(n_chunks,),
        in_specs=[
            pl.BlockSpec((TB, INPUT_SIZE), lambda i: (i, 0)),    # x chunk streamed
            pl.BlockSpec((2, HP), lambda i: (0, 0)),             # initial state (resident)
            pl.BlockSpec((_P1_ROWS, HP), lambda i: (0, 0)),      # packed fc1/fc2 weights
            pl.BlockSpec((_P2_ROWS, GP), lambda i: (0, 0)),      # packed LSTM weights
        ],
        out_specs=(
            pl.BlockSpec((TB, HP), lambda i: (i, 0)),            # y chunk (lane-dense)
            pl.BlockSpec((2, HP), lambda i: (0, 0)),             # final state (resident)
        ),
        scratch_shapes=[
            pltpu.VMEM((2, HP), jnp.float32),                    # chunk-to-chunk h/c carry
            pltpu.VMEM((TB, HP), jnp.float32),                   # h_t accumulation for fc2
        ],
    )

    ys_p, state_out = pl.pallas_call(
        _make_seq_kernel(TB, T, n_chunks),
        out_shape=(jax.ShapeDtypeStruct((Tp, HP), jnp.float32),
                   jax.ShapeDtypeStruct((2, HP), jnp.float32)),
        grid_spec=grid_spec,
        compiler_params=pltpu.CompilerParams(dimension_semantics=("arbitrary",)),
    )(xs_p, state0, params["p1"], params["p2"])

    ys = ys_p[:T, :2]
    hn = state_out[0, :H].reshape(1, 1, H)   # PyTorch hidden shape (num_layers, batch, H)
    cn = state_out[1, :H].reshape(1, 1, H)
    return ys, (hn, cn)


def time_action_predict(x, params, hidden=None, hidden_size=HIDDEN_SIZE):
    """Matches TimeActionPredict.forward exactly: x is (1, input_size);
    returns (y[1,2], (h_n, c_n))."""
    assert x.ndim == 2, "data shape is incorrect."
    y, hid = time_action_predict_sequence(x, params, hidden, hidden_size)
    return y, hid


# ----------------------------------------------------------------------------
# Pure-JAX reference (PyTorch semantics)
# ----------------------------------------------------------------------------
def reference_step(x, raw, h, c, hidden_size=HIDDEN_SIZE):
    H = hidden_size
    a = jnp.maximum(x @ raw["w1"].T + raw["b1"], 0.0)
    gates = a @ raw["w_ih"].T + h @ raw["w_hh"].T + raw["b_ih"] + raw["b_hh"]
    i = jax.nn.sigmoid(gates[:, :H])
    f = jax.nn.sigmoid(gates[:, H:2 * H])
    g = jnp.tanh(gates[:, 2 * H:3 * H])
    o = jax.nn.sigmoid(gates[:, 3 * H:])
    c_new = f * c + i * g
    h_new = o * jnp.tanh(c_new)
    y = h_new @ raw["w2"].T + raw["b2"]
    return y, h_new, c_new


def reference_sequence(xs, raw, hidden_size=HIDDEN_SIZE):
    H = hidden_size
    h, c = jnp.zeros((1, H)), jnp.zeros((1, H))
    ys = []
    for t in range(xs.shape[0]):
        y, h, c = reference_step(xs[t:t + 1], raw, h, c, H)
        ys.append(y)
    return jnp.concatenate(ys, axis=0), h, c


if __name__ == "__main__":
    key = jax.random.PRNGKey(0)
    k_x, k_x2, k_xs, k_xl, k_p = jax.random.split(key, 5)

    # forward asserts a 2-D input; x.view(1, 1, -1) implies batch = 1
    x = jax.random.normal(k_x, (1, INPUT_SIZE), jnp.float32)
    raw = init_raw_params(k_p)
    params = pack_params(raw)

    H = HIDDEN_SIZE
    rtol, atol = 1e-4, 1e-5

    # --- single step, hidden=None (reset_state) ---
    y, (h_n, c_n) = time_action_predict(x, params)
    jax.block_until_ready((y, h_n, c_n))
    y_ref, h_ref, c_ref = reference_step(x, raw, jnp.zeros((1, H)), jnp.zeros((1, H)))
    assert y.shape == (1, 2) and h_n.shape == (1, 1, H) and c_n.shape == (1, 1, H)
    np.testing.assert_allclose(np.asarray(y), np.asarray(y_ref), rtol=rtol, atol=atol)
    np.testing.assert_allclose(np.asarray(h_n[0]), np.asarray(h_ref), rtol=rtol, atol=atol)
    np.testing.assert_allclose(np.asarray(c_n[0]), np.asarray(c_ref), rtol=rtol, atol=atol)

    # --- single step with carried hidden state ---
    x2 = jax.random.normal(k_x2, (1, INPUT_SIZE), jnp.float32)
    y2, (h_n2, c_n2) = time_action_predict(x2, params, (h_n, c_n))
    jax.block_until_ready((y2, h_n2, c_n2))
    y2_ref, h2_ref, c2_ref = reference_step(x2, raw, h_ref, c_ref)
    np.testing.assert_allclose(np.asarray(y2), np.asarray(y2_ref), rtol=rtol, atol=atol)
    np.testing.assert_allclose(np.asarray(h_n2[0]), np.asarray(h2_ref), rtol=rtol, atol=atol)
    np.testing.assert_allclose(np.asarray(c_n2[0]), np.asarray(c2_ref), rtol=rtol, atol=atol)

    # --- fused multi-timestep variant, single chunk (T=8) ---
    T = 8
    xs = jax.random.normal(k_xs, (T, INPUT_SIZE), jnp.float32)
    ys, (h_T, c_T) = time_action_predict_sequence(xs, params)
    jax.block_until_ready((ys, h_T, c_T))
    ys_ref, h_r, c_r = reference_sequence(xs, raw)
    assert ys.shape == (T, 2)
    np.testing.assert_allclose(np.asarray(ys), np.asarray(ys_ref), rtol=rtol, atol=atol)
    np.testing.assert_allclose(np.asarray(h_T[0]), np.asarray(h_r), rtol=rtol, atol=atol)
    np.testing.assert_allclose(np.asarray(c_T[0]), np.asarray(c_r), rtol=rtol, atol=atol)

    # --- fused multi-timestep variant, chunked grid with tail masking (T=37) ---
    Tl = 37
    xl = jax.random.normal(k_xl, (Tl, INPUT_SIZE), jnp.float32)
    yl, (h_L, c_L) = time_action_predict_sequence(xl, params)
    jax.block_until_ready((yl, h_L, c_L))
    yl_ref, hl_r, cl_r = reference_sequence(xl, raw)
    assert yl.shape == (Tl, 2)
    np.testing.assert_allclose(np.asarray(yl), np.asarray(yl_ref), rtol=rtol, atol=atol)
    np.testing.assert_allclose(np.asarray(h_L[0]), np.asarray(hl_r), rtol=rtol, atol=atol)
    np.testing.assert_allclose(np.asarray(c_L[0]), np.asarray(cl_r), rtol=rtol, atol=atol)

    print("KERNEL_OK")
</pallas_src>

<mosaic_0001>
module attributes {stable_mosaic.version = 11 : i64} {
  func.func @kernel(%arg0: i32, %arg1: memref<8x256xf32, #tpu.memory_space<vmem>>, %arg2: memref<2x128xf32, #tpu.memory_space<vmem>>, %arg3: memref<392x128xf32, #tpu.memory_space<vmem>>, %arg4: memref<264x512xf32, #tpu.memory_space<vmem>>, %arg5: memref<8x128xf32, #tpu.memory_space<vmem>>, %arg6: memref<2x128xf32, #tpu.memory_space<vmem>>, %arg7: memref<2x128xf32, #tpu.memory_space<vmem>>, %arg8: memref<8x128xf32, #tpu.memory_space<vmem>>) attributes {dimension_semantics = [#tpu.dimension_semantics<arbitrary>], iteration_bounds = array<i64: 1>, scalar_prefetch = 0 : i64, scratch_operands = 2 : i64, tpu.core_type = #tpu.core_type<tc>, window_params = [{transform_indices = @transform_0, window_bounds = array<i64: 8, 256>}, {pipeline_mode = #tpu.pipeline_mode<synchronous>, transform_indices = @transform_1, window_bounds = array<i64: 2, 128>}, {pipeline_mode = #tpu.pipeline_mode<synchronous>, transform_indices = @transform_2, window_bounds = array<i64: 392, 128>}, {pipeline_mode = #tpu.pipeline_mode<synchronous>, transform_indices = @transform_3, window_bounds = array<i64: 264, 512>}, {transform_indices = @transform_4, window_bounds = array<i64: 8, 128>}, {pipeline_mode = #tpu.pipeline_mode<synchronous>, transform_indices = @transform_5, window_bounds = array<i64: 2, 128>}]} {
    %c0 = arith.constant 0 : index
    %c0_0 = arith.constant 0 : index
    %0 = vector.load %arg3[%c0, %c0_0] : memref<392x128xf32, #tpu.memory_space<vmem>>, vector<256x128xf32>
    %c256 = arith.constant 256 : index
    %c0_1 = arith.constant 0 : index
    %1 = vector.load %arg3[%c256, %c0_1] : memref<392x128xf32, #tpu.memory_space<vmem>>, vector<128x128xf32>
    %c384 = arith.constant 384 : index
    %c0_2 = arith.constant 0 : index
    %2 = vector.load %arg3[%c384, %c0_2] : memref<392x128xf32, #tpu.memory_space<vmem>>, vector<1x128xf32>
    %c385 = arith.constant 385 : index
    %c0_3 = arith.constant 0 : index
    %3 = vector.load %arg3[%c385, %c0_3] : memref<392x128xf32, #tpu.memory_space<vmem>>, vector<1x128xf32>
    %c0_4 = arith.constant 0 : index
    %c0_5 = arith.constant 0 : index
    %4 = vector.load %arg4[%c0_4, %c0_5] : memref<264x512xf32, #tpu.memory_space<vmem>>, vector<128x512xf32>
    %c128 = arith.constant 128 : index
    %c0_6 = arith.constant 0 : index
    %5 = vector.load %arg4[%c128, %c0_6] : memref<264x512xf32, #tpu.memory_space<vmem>>, vector<128x512xf32>
    %c256_7 = arith.constant 256 : index
    %c0_8 = arith.constant 0 : index
    %6 = vector.load %arg4[%c256_7, %c0_8] : memref<264x512xf32, #tpu.memory_space<vmem>>, vector<1x512xf32>
    %c0_i32 = arith.constant 0 : i32
    %7 = arith.cmpi eq, %arg0, %c0_i32 : i32
    %8 = arith.extui %7 : i1 to i32
    %c0_i32_9 = arith.constant 0 : i32
    %9 = arith.cmpi ne, %8, %c0_i32_9 : i32
    scf.if %9 {
      %c0_42 = arith.constant 0 : index
      %c0_43 = arith.constant 0 : index
      %67 = vector.load %arg2[%c0_42, %c0_43] : memref<2x128xf32, #tpu.memory_space<vmem>>, vector<2x128xf32>
      %c0_44 = arith.constant 0 : index
      %c0_45 = arith.constant 0 : index
      %68 = vector.load %arg7[%c0_44, %c0_45] : memref<2x128xf32, #tpu.memory_space<vmem>>, vector<2x128xf32>
      tpu.vector_store %arg7[%c0_44, %c0_45], %67 {strides = array<i32>} : memref<2x128xf32, #tpu.memory_space<vmem>>, vector<2x128xf32>,
    } else {
    }
    %c0_10 = arith.constant 0 : index
    %c0_11 = arith.constant 0 : index
    %10 = vector.load %arg1[%c0_10, %c0_11] : memref<8x256xf32, #tpu.memory_space<vmem>>, vector<8x256xf32>
    %cst = arith.constant dense<0.000000e+00> : vector<8x128xf32>
    %11 = tpu.matmul %10, %0, %cst {dimension_numbers = #tpu.dot_dimension_numbers<[1], [0], [0], [1], [0, 0, 1, 1], [], []>} : vector<8x256xf32>, vector<256x128xf32>, vector<8x128xf32> -> vector<8x128xf32>
    %12 = vector.broadcast %2 : vector<1x128xf32> to vector<8x128xf32>
    %13 = arith.addf %11, %12 : vector<8x128xf32>
    %cst_12 = arith.constant 0.000000e+00 : f32
    %14 = vector.broadcast %cst_12 : f32 to vector<8x128xf32>
    %15 = arith.maximumf %13, %14 : vector<8x128xf32>
    %cst_13 = arith.constant dense<0.000000e+00> : vector<8x512xf32>
    %16 = tpu.matmul %15, %4, %cst_13 {dimension_numbers = #tpu.dot_dimension_numbers<[1], [0], [0], [1], [0, 0, 1, 1], [], []>} : vector<8x128xf32>, vector<128x512xf32>, vector<8x512xf32> -> vector<8x512xf32>
    %17 = vector.broadcast %6 : vector<1x512xf32> to vector<8x512xf32>
    %18 = arith.addf %16, %17 : vector<8x512xf32>
    %c0_14 = arith.constant 0 : index
    %c0_15 = arith.constant 0 : index
    %19 = vector.load %arg7[%c0_14, %c0_15] : memref<2x128xf32, #tpu.memory_space<vmem>>, vector<1x128xf32>
    %c1 = arith.constant 1 : index
    %c0_16 = arith.constant 0 : index
    %20 = vector.load %arg7[%c1, %c0_16] : memref<2x128xf32, #tpu.memory_space<vmem>>, vector<1x128xf32>
    %21 = vector.extract_strided_slice %18 {offsets = [0, 0], sizes = [1, 512], strides = [1, 1]} : vector<8x512xf32> to vector<1x512xf32>
    %cst_17 = arith.constant dense<0.000000e+00> : vector<1x512xf32>
    %22 = tpu.matmul %19, %5, %cst_17 {dimension_numbers = #tpu.dot_dimension_numbers<[1], [0], [0], [1], [0, 0, 1, 1], [], []>} : vector<1x128xf32>, vector<128x512xf32>, vector<1x512xf32> -> vector<1x512xf32>
    %23 = arith.addf %21, %22 : vector<1x512xf32>
    %24 = vector.extract_strided_slice %23 {offsets = [0, 0], sizes = [1, 128], strides = [1, 1]} : vector<1x512xf32> to vector<1x128xf32>
    %25 = arith.negf %24 : vector<1x128xf32>
    %26 = math.exp %25 : vector<1x128xf32>
    %cst_18 = arith.constant 1.000000e+00 : f32
    %27 = vector.broadcast %cst_18 : f32 to vector<1x128xf32>
    %28 = arith.addf %27, %26 : vector<1x128xf32>
    %29 = arith.divf %27, %28 : vector<1x128xf32>
    %30 = vector.extract_strided_slice %23 {offsets = [0, 128], sizes = [1, 128], strides = [1, 1]} : vector<1x512xf32> to vector<1x128xf32>
    %31 = arith.negf %30 : vector<1x128xf32>
    %32 = math.exp %31 : vector<1x128xf32>
    %cst_19 = arith.constant 1.000000e+00 : f32
    %33 = vector.broadcast %cst_19 : f32 to vector<1x128xf32>
    %34 = arith.addf %33, %32 : vector<1x128xf32>
    %35 = arith.divf %33, %34 : vector<1x128xf32>
    %36 = vector.extract_strided_slice %23 {offsets = [0, 256], sizes = [1, 128], strides = [1, 1]} : vector<1x512xf32> to vector<1x128xf32>
    %37 = math.tanh %36 : vector<1x128xf32>
    %38 = vector.extract_strided_slice %23 {offsets = [0, 384], sizes = [1, 128], strides = [1, 1]} : vector<1x512xf32> to vector<1x128xf32>
    %39 = arith.negf %38 : vector<1x128xf32>
    %40 = math.exp %39 : vector<1x128xf32>
    %cst_20 = arith.constant 1.000000e+00 : f32
    %41 = vector.broadcast %cst_20 : f32 to vector<1x128xf32>
    %42 = arith.addf %41, %40 : vector<1x128xf32>
    %43 = arith.divf %41, %42 : vector<1x128xf32>
    %44 = arith.mulf %35, %20 : vector<1x128xf32>
    %45 = arith.mulf %29, %37 : vector<1x128xf32>
    %46 = arith.addf %44, %45 : vector<1x128xf32>
    %47 = math.tanh %46 : vector<1x128xf32>
    %48 = arith.mulf %43, %47 : vector<1x128xf32>
    %c0_21 = arith.constant 0 : index
    %c0_22 = arith.constant 0 : index
    %49 = vector.load %arg8[%c0_21, %c0_22] : memref<8x128xf32, #tpu.memory_space<vmem>>, vector<1x128xf32>
    tpu.vector_store %arg8[%c0_21, %c0_22], %48 {strides = array<i32>} : memref<8x128xf32, #tpu.memory_space<vmem>>, vector<1x128xf32>,
    %c1_23 = arith.constant 1 : index
    %c0_24 = arith.constant 0 : index
    %50 = vector.load %arg8[%c1_23, %c0_24] : memref<8x128xf32, #tpu.memory_space<vmem>>, vector<1x128xf32>
    tpu.vector_store %arg8[%c1_23, %c0_24], %48 {strides = array<i32>} : memref<8x128xf32, #tpu.memory_space<vmem>>, vector<1x128xf32>,
    %c2 = arith.constant 2 : index
    %c0_25 = arith.constant 0 : index
    %51 = vector.load %arg8[%c2, %c0_25] : memref<8x128xf32, #tpu.memory_space<vmem>>, vector<1x128xf32>
    tpu.vector_store %arg8[%c2, %c0_25], %48 {strides = array<i32>} : memref<8x128xf32, #tpu.memory_space<vmem>>, vector<1x128xf32>,
    %c3 = arith.constant 3 : index
    %c0_26 = arith.constant 0 : index
    %52 = vector.load %arg8[%c3, %c0_26] : memref<8x128xf32, #tpu.memory_space<vmem>>, vector<1x128xf32>
    tpu.vector_store %arg8[%c3, %c0_26], %48 {strides = array<i32>} : memref<8x128xf32, #tpu.memory_space<vmem>>, vector<1x128xf32>,
    %c4 = arith.constant 4 : index
    %c0_27 = arith.constant 0 : index
    %53 = vector.load %arg8[%c4, %c0_27] : memref<8x128xf32, #tpu.memory_space<vmem>>, vector<1x128xf32>
    tpu.vector_store %arg8[%c4, %c0_27], %48 {strides = array<i32>} : memref<8x128xf32, #tpu.memory_space<vmem>>, vector<1x128xf32>,
    %c5 = arith.constant 5 : index
    %c0_28 = arith.constant 0 : index
    %54 = vector.load %arg8[%c5, %c0_28] : memref<8x128xf32, #tpu.memory_space<vmem>>, vector<1x128xf32>
    tpu.vector_store %arg8[%c5, %c0_28], %48 {strides = array<i32>} : memref<8x128xf32, #tpu.memory_space<vmem>>, vector<1x128xf32>,
    %c6 = arith.constant 6 : index
    %c0_29 = arith.constant 0 : index
    %55 = vector.load %arg8[%c6, %c0_29] : memref<8x128xf32, #tpu.memory_space<vmem>>, vector<1x128xf32>
    tpu.vector_store %arg8[%c6, %c0_29], %48 {strides = array<i32>} : memref<8x128xf32, #tpu.memory_space<vmem>>, vector<1x128xf32>,
    %c7 = arith.constant 7 : index
    %c0_30 = arith.constant 0 : index
    %56 = vector.load %arg8[%c7, %c0_30] : memref<8x128xf32, #tpu.memory_space<vmem>>, vector<1x128xf32>
    tpu.vector_store %arg8[%c7, %c0_30], %48 {strides = array<i32>} : memref<8x128xf32, #tpu.memory_space<vmem>>, vector<1x128xf32>,
    %c0_31 = arith.constant 0 : index
    %c0_32 = arith.constant 0 : index
    %57 = vector.load %arg7[%c0_31, %c0_32] : memref<2x128xf32, #tpu.memory_space<vmem>>, vector<1x128xf32>
    tpu.vector_store %arg7[%c0_31, %c0_32], %48 {strides = array<i32>} : memref<2x128xf32, #tpu.memory_space<vmem>>, vector<1x128xf32>,
    %c1_33 = arith.constant 1 : index
    %c0_34 = arith.constant 0 : index
    %58 = vector.load %arg7[%c1_33, %c0_34] : memref<2x128xf32, #tpu.memory_space<vmem>>, vector<1x128xf32>
    tpu.vector_store %arg7[%c1_33, %c0_34], %46 {strides = array<i32>} : memref<2x128xf32, #tpu.memory_space<vmem>>, vector<1x128xf32>,
    %c0_35 = arith.constant 0 : index
    %c0_36 = arith.constant 0 : index
    %59 = vector.load %arg8[%c0_35, %c0_36] : memref<8x128xf32, #tpu.memory_space<vmem>>, vector<8x128xf32>
    %cst_37 = arith.constant dense<0.000000e+00> : vector<8x128xf32>
    %60 = tpu.matmul %59, %1, %cst_37 {dimension_numbers = #tpu.dot_dimension_numbers<[1], [0], [0], [1], [0, 0, 1, 1], [], []>} : vector<8x128xf32>, vector<128x128xf32>, vector<8x128xf32> -> vector<8x128xf32>
    %61 = vector.broadcast %3 : vector<1x128xf32> to vector<8x128xf32>
    %62 = arith.addf %60, %61 : vector<8x128xf32>
    %c0_38 = arith.constant 0 : index
    %c0_39 = arith.constant 0 : index
    %63 = vector.load %arg5[%c0_38, %c0_39] : memref<8x128xf32, #tpu.memory_space<vmem>>, vector<8x128xf32>
    tpu.vector_store %arg5[%c0_38, %c0_39], %62 {strides = array<i32>} : memref<8x128xf32, #tpu.memory_space<vmem>>, vector<8x128xf32>,
    %c0_i32_40 = arith.constant 0 : i32
    %64 = arith.cmpi eq, %arg0, %c0_i32_40 : i32
    %65 = arith.extui %64 : i1 to i32
    %c0_i32_41 = arith.constant 0 : i32
    %66 = arith.cmpi ne, %65, %c0_i32_41 : i32
    scf.if %66 {
      %c0_42 = arith.constant 0 : index
      %c0_43 = arith.constant 0 : index
      %67 = vector.load %arg6[%c0_42, %c0_43] : memref<2x128xf32, #tpu.memory_space<vmem>>, vector<1x128xf32>
      tpu.vector_store %arg6[%c0_42, %c0_43], %48 {strides = array<i32>} : memref<2x128xf32, #tpu.memory_space<vmem>>, vector<1x128xf32>,
      %c1_44 = arith.constant 1 : index
      %c0_45 = arith.constant 0 : index
      %68 = vector.load %arg6[%c1_44, %c0_45] : memref<2x128xf32, #tpu.memory_space<vmem>>, vector<1x128xf32>
      tpu.vector_store %arg6[%c1_44, %c0_45], %46 {strides = array<i32>} : memref<2x128xf32, #tpu.memory_space<vmem>>, vector<1x128xf32>,
    } else {
    }
    return
  }
  func.func @transform_0(%arg0: i32) -> (i32, i32) {
    %c0_i32 = arith.constant 0 : i32
    %c0_i32_0 = arith.constant 0 : i32
    return %arg0, %c0_i32 : i32, i32
  }
  func.func @transform_1(%arg0: i32) -> (i32, i32) {
    %c0_i32 = arith.constant 0 : i32
    %c0_i32_0 = arith.constant 0 : i32
    %c0_i32_1 = arith.constant 0 : i32
    return %c0_i32, %c0_i32_0 : i32, i32
  }
  func.func @transform_2(%arg0: i32) -> (i32, i32) {
    %c0_i32 = arith.constant 0 : i32
    %c0_i32_0 = arith.constant 0 : i32
    %c0_i32_1 = arith.constant 0 : i32
    return %c0_i32, %c0_i32_0 : i32, i32
  }
  func.func @transform_3(%arg0: i32) -> (i32, i32) {
    %c0_i32 = arith.constant 0 : i32
    %c0_i32_0 = arith.constant 0 : i32
    %c0_i32_1 = arith.constant 0 : i32
    return %c0_i32, %c0_i32_0 : i32, i32
  }
  func.func @transform_4(%arg0: i32) -> (i32, i32) {
    %c0_i32 = arith.constant 0 : i32
    %c0_i32_0 = arith.constant 0 : i32
    return %arg0, %c0_i32 : i32, i32
  }
  func.func @transform_5(%arg0: i32) -> (i32, i32) {
    %c0_i32 = arith.constant 0 : i32
    %c0_i32_0 = arith.constant 0 : i32
    %c0_i32_1 = arith.constant 0 : i32
    return %c0_i32, %c0_i32_0 : i32, i32
  }
}

</mosaic_0001>

<bundles_post_ra>
// kernel: tpu_custom_call.1
= control target key start
LH: loop header
LB: loop body
LE: loop exit
PB: predicated region body
PF: predicated region fallthrough
CT: control target
= control target key end

     0   :  { %11 = vsyncpa [#allocation5], 0  ;;  %s1123_s0 = inlined_call_operand.hbm [shape: f32[8,256], index: 0, kind: input, shape index: {}]   ;;  %s1124_s1 = inlined_call_operand.hbm [shape: f32[2,128], index: 1, kind: input, shape index: {}]   ;;  %s1125_s2 = inlined_call_operand.hbm [shape: f32[392,128], index: 2, kind: input, shape index: {}]   ;;  %s1126_s3 = inlined_call_operand.hbm [shape: f32[264,512], index: 3, kind: input, shape index: {}]   ;;  %s1127_s4 = inlined_call_operand.hbm [shape: f32[8,128], index: 4, kind: output, shape index: {0}]   ;;  %s1128_s5 = inlined_call_operand.hbm [shape: f32[2,128], index: 5, kind: output, shape index: {1}]  }
   0x1   :  { %12 = vsyncpa [#allocation8], 0 }
   0x2   :  { %13 = vsyncpa [#allocation11], 0 }
   0x3   :  { %14 = vsyncpa [#allocation6], 0 }
   0x4   :  { %15 = vsyncpa [#allocation14], 0  ;;  %s1042_s18 = smov [#allocation7]   ;;  %s1043_s20 = smov [#allocation4]  }
   0x5   :  { %s32_s19 = sshll.u32 %s1042_s18, 4  ;;  %s22_s21 = sshll.u32 %s1043_s20, 4  ;;  %s33_s19 = int_to_ptr.vmem [resolvable:$true] %s32_s19  ;;  %s23_s21 = int_to_ptr.vmem [resolvable:$true] %s22_s21 }
   0x6   :  { %s920_s22 = scalar_lea.vmem %s33_s19, 32  ;;  %p925_p1 = scmp.lt.s32.totalorder %s33_s19, %s33_s19 }
   0x7   :  { %p921_p0 = scmp.ne.s32.totalorder %s33_s19, %s920_s22  ;;  %p926_p2 = scmp.lt.s32.totalorder %s920_s22, %s920_s22 }
   0x9   :  { %p927_p3 = por %p926_p2, %p925_p1 }
   0xb   :  { %p928_p4 = pnand %p927_p3, %p921_p0 }
   0xd   :  { %931 = shalt.err (!%p928_p4)
}
   0xe   :  { %35 = dma.hbm_to_vmem [thread:$0]  %s1124_s1, 32, %s33_s19, [#allocation8]  }
   0xf   :  { %s940_s25 = scalar_lea.vmem %s23_s21, 256  ;;  %p945_p6 = scmp.lt.s32.totalorder %s23_s21, %s23_s21 }
  0x10   :  { %p941_p5 = scmp.ne.s32.totalorder %s23_s21, %s940_s25  ;;  %p946_p7 = scmp.lt.s32.totalorder %s940_s25, %s940_s25 }
  0x12   :  { %p947_p8 = por %p946_p7, %p945_p6 }
  0x14   :  { %p948_p9 = pnand %p947_p8, %p941_p5 }
  0x16   :  { %951 = shalt.err (!%p948_p9)
}
  0x17   :  { %25 = dma.hbm_to_vmem [thread:$0]  %s1123_s0, 256, %s23_s21, [#allocation5]  }
  0x18   :  { %s1044_s28 = smov [#allocation9]  }
  0x19   :  { %s41_s29 = sshll.u32 %s1044_s28, 4  ;;  %s42_s29 = int_to_ptr.vmem [resolvable:$true] %s41_s29 }
  0x1a   :  { %s960_s30 = scalar_lea.vmem %s42_s29, 6272  ;;  %p965_p11 = scmp.lt.s32.totalorder %s42_s29, %s42_s29 }
  0x1b   :  { %p961_p10 = scmp.ne.s32.totalorder %s42_s29, %s960_s30  ;;  %p966_p12 = scmp.lt.s32.totalorder %s960_s30, %s960_s30 }
  0x1d   :  { %p967_p13 = por %p966_p12, %p965_p11 }
  0x1f   :  { %p968_p0 = pnand %p967_p13, %p961_p10 }
  0x21   :  { %971 = shalt.err (!%p968_p0)
}
  0x22   :  { %s1045_s1 = smov 128   ;;  %s1046_s6 = smov 8  }
  0x23   :  { %47 = dma.hbm_to_vmem [thread:$0]  %s1125_s2, 6272, %s42_s29, [#allocation8], %s1045_s1, %s1045_s1, %s1046_s6  }
  0x24   :  { %s1047_s9 = smov [#allocation10]  }
  0x25   :  { %s53_s10 = sshll.u32 %s1047_s9, 4  ;;  %s54_s10 = int_to_ptr.vmem [resolvable:$true] %s53_s10 }
  0x26   :  { %s980_s0 = scalar_lea.vmem %s54_s10, 16896  ;;  %p985_p2 = scmp.lt.s32.totalorder %s54_s10, %s54_s10 }
  0x27   :  { %p981_p1 = scmp.ne.s32.totalorder %s54_s10, %s980_s0  ;;  %p986_p3 = scmp.lt.s32.totalorder %s980_s0, %s980_s0 }
  0x29   :  { %p987_p4 = por %p986_p3, %p985_p2 }
  0x2b   :  { %p988_p5 = pnand %p987_p4, %p981_p1 }
  0x2d   :  { %991 = shalt.err (!%p988_p5)
}
  0x2e   :  { %s1048_s11 = smov 512   ;;  %s1049_s12 = smov 32  }
  0x2f   :  { %59 = dma.hbm_to_vmem [thread:$0]  %s1126_s3, 16896, %s54_s10, [#allocation11], %s1048_s11, %s1048_s11, %s1049_s12  }
  0x30   :  { %1032 = dma.done.wait [#allocation5], 256  }
  0x31   :  { %1033 = vsyncadd [#allocation5], 4294967040 }
  0x32   :  { %1034 = dma.done.wait [#allocation8], 6304  }
  0x33   :  { %1035 = vsyncadd [#allocation8], 4294960992 }
  0x34   :  { %1036 = dma.done.wait [#allocation11], 16896  }
  0x35   :  { %1037 = vsyncadd [#allocation11], 4294950400  ;;  %v103_v0 = vld [vmem:[#allocation9 + $0xf8] sm:$0xff]  ;;  %v102_v2 = vld [vmem:[#allocation9 + $0xf0] sm:$0xff]  ;;  %vm1051_vm0 = vmmov 0   ;;  %s1052_s2 = smov [#allocation13]  }
  0x36   :  { %v87_v1 = vld [vmem:[#allocation9 + $0x78] sm:$0xff]  ;;  %797 = vmatprep.subr.mxu0 %v103_v0  ;;  %v86_v3 = vld [vmem:[#allocation9 + $0x70] sm:$0xff]  ;;  %v101_v4 = vld [vmem:[#allocation9 + $0xe8] sm:$0xff]  ;;  %s777_s3 = sshll.u32 %s1052_s2, 4  ;;  %s778_s3 = int_to_ptr.vmem [resolvable:$true] %s777_s3 }
  0x37   :  { %798 = vmatpush3.msra.mxu0 %v87_v1  ;;  %v85_v5 = vld [vmem:[#allocation9 + $0x68] sm:$0xff]  ;;  %v100_v6 = vld [vmem:[#allocation9 + $0xe0] sm:$0xff]  ;;  %v99_v8 = vld [vmem:[#allocation9 + $0xd8] sm:$0xff]  ;;  %s992_s15 = scalar_lea.vmem %s778_s3, 32  ;;  %p997_p7 = scmp.lt.s32.totalorder %s778_s3, %s778_s3 }
  0x38   :  { %799 = vmatprep.subr.mxu0 %v102_v2  ;;  %v84_v7 = vld [vmem:[#allocation9 + $0x60] sm:$0xff]  ;;  %v83_v9 = vld [vmem:[#allocation9 + $0x58] sm:$0xff]  ;;  %v98_v10 = vld [vmem:[#allocation9 + $0xd0] sm:$0xff]  ;;  %p993_p6 = scmp.ne.s32.totalorder %s778_s3, %s992_s15  ;;  %p998_p8 = scmp.lt.s32.totalorder %s992_s15, %s992_s15 }
  0x39   :  { %800 = vmatpush3.msra.mxu0 %v86_v3  ;;  %v82_v11 = vld [vmem:[#allocation9 + $0x50] sm:$0xff]  ;;  %v97_v12 = vld [vmem:[#allocation9 + $0xc8] sm:$0xff]  ;;  %v96_v16 = vld [vmem:[#allocation9 + $0xc0] sm:$0xff] }
  0x3a   :  { %801 = vmatprep.subr.mxu0 %v101_v4  ;;  %v259_v13 = vld [vmem:[#allocation4 + $0x8] sm:$0xff]  ;;  %v81_v14 = vld [vmem:[#allocation9 + $0x48] sm:$0xff]  ;;  %v80_v19 = vld [vmem:[#allocation9 + $0x40] sm:$0xff]  ;;  %p999_p9 = por %p998_p8, %p997_p7 }
  0x3b   :  { %802 = vmatpush3.msra.mxu0 %v85_v5  ;;  %328 = vmatprep.mubr.f32.mxu0 %v259_v13  ;;  %v183_v15 = vld [vmem:[#allocation10 + $0x1e8] sm:$0xff]  ;;  %v182_v17 = vld [vmem:[#allocation10 + $0x1e0] sm:$0xff]  ;;  %v95_v21 = vld [vmem:[#allocation9 + $0xb8] sm:$0xff] }
  0x3c   :  { %803 = vmatprep.subr.mxu0 %v100_v6  ;;  %356 = vmatprep.subr.mxu1 %v183_v15  ;;  %v179_v18 = vld [vmem:[#allocation10 + $0x1c8] sm:$0xff]  ;;  %v178_v20 = vld [vmem:[#allocation10 + $0x1c0] sm:$0xff]  ;;  %v79_v24 = vld [vmem:[#allocation9 + $0x38] sm:$0xff]  ;;  %p1000_p10 = pnand %p999_p9, %p993_p6 }
  0x3d   :  { %804 = vmatpush3.msra.mxu0 %v84_v7  ;;  %357 = vmatpush1.msra.mxu1 %v182_v17  ;;  %v175_v22 = vld [vmem:[#allocation10 + $0x1a8] sm:$0xff]  ;;  %v174_v23 = vld [vmem:[#allocation10 + $0x1a0] sm:$0xff]  ;;  %v92_v34 = vld [vmem:[#allocation9 + $0xa0] sm:$0xff] }
  0x3e   :  { %805 = vmatprep.subr.mxu0 %v99_v8  ;;  %358 = vmatprep.subr.mxu1 %v179_v18  ;;  %v171_v25 = vld [vmem:[#allocation10 + $0x188] sm:$0xff]  ;;  %v170_v27 = vld [vmem:[#allocation10 + $0x180] sm:$0xff]  ;;  %v76_v36 = vld [vmem:[#allocation9 + $0x20] sm:$0xff] }
  0x3f   :  { %806 = vmatpush3.msra.mxu0 %v83_v9  ;;  %359 = vmatpush1.msra.mxu1 %v178_v20  ;;  %v94_v26 = vld [vmem:[#allocation9 + $0xb0] sm:$0xff]  ;;  %v93_v30 = vld [vmem:[#allocation9 + $0xa8] sm:$0xff]  ;;  %v91_v38 = vld [vmem:[#allocation9 + $0x98] sm:$0xff] }
  0x40   :  { %807 = vmatprep.subr.mxu0 %v98_v10  ;;  %360 = vmatprep.subr.mxu1 %v175_v22  ;;  %v78_v28 = vld [vmem:[#allocation9 + $0x30] sm:$0xff]  ;;  %v166_v31 = vld [vmem:[#allocation10 + $0x160] sm:$0xff]  ;;  %v75_v40 = vld [vmem:[#allocation9 + $0x18] sm:$0xff] }
  0x41   :  { %808 = vmatpush3.msra.mxu0 %v82_v11  ;;  %361 = vmatpush1.msra.mxu1 %v174_v23  ;;  %v167_v29 = vld [vmem:[#allocation10 + $0x168] sm:$0xff]  ;;  %v77_v32 = vld [vmem:[#allocation9 + $0x28] sm:$0xff]  ;;  %v88_v50 = vld [vmem:[#allocation9 + $0x80] sm:$0xff] }
  0x42   :  { %809 = vmatprep.subr.mxu0 %v97_v12  ;;  %362 = vmatprep.subr.mxu1 %v171_v25  ;;  %v163_v33 = vld [vmem:[#allocation10 + $0x148] sm:$0xff]  ;;  %v162_v35 = vld [vmem:[#allocation10 + $0x140] sm:$0xff]  ;;  %v72_v52 = vld [vmem:[#allocation9] sm:$0xff] }
  0x43   :  { %810 = vmatpush3.msra.mxu0 %v81_v14  ;;  %363 = vmatpush1.msra.mxu1 %v170_v27  ;;  %v159_v37 = vld [vmem:[#allocation10 + $0x128] sm:$0xff]  ;;  %v158_v39 = vld [vmem:[#allocation10 + $0x120] sm:$0xff]  ;;  %v185_v55 = vld [vmem:[#allocation10 + $0x1f8] sm:$0xff] }
  0x44   :  { %811 = vmatprep.subr.mxu0 %v96_v16  ;;  %364 = vmatprep.subr.mxu1 %v167_v29  ;;  %v155_v41 = vld [vmem:[#allocation10 + $0x108] sm:$0xff]  ;;  %v154_v43 = vld [vmem:[#allocation10 + $0x100] sm:$0xff]  ;;  %v184_v56 = vld [vmem:[#allocation10 + $0x1f0] sm:$0xff] }
  0x45   :  { %812 = vmatpush3.msra.mxu0 %v80_v19  ;;  %365 = vmatpush1.msra.mxu1 %v166_v31  ;;  %v90_v42 = vld [vmem:[#allocation9 + $0x90] sm:$0xff]  ;;  %v89_v46 = vld [vmem:[#allocation9 + $0x88] sm:$0xff]  ;;  %v181_v58 = vld [vmem:[#allocation10 + $0x1d8] sm:$0xff] }
  0x46   :  { %813 = vmatprep.subr.mxu0 %v95_v21  ;;  %366 = vmatprep.subr.mxu1 %v163_v33  ;;  %v74_v44 = vld [vmem:[#allocation9 + $0x10] sm:$0xff]  ;;  %v150_v47 = vld [vmem:[#allocation10 + $0xe0] sm:$0xff]  ;;  %v180_v60 = vld [vmem:[#allocation10 + $0x1d0] sm:$0xff] }
  0x47   :  { %814 = vmatpush3.msra.mxu0 %v79_v24  ;;  %367 = vmatpush1.msra.mxu1 %v162_v35  ;;  %v151_v45 = vld [vmem:[#allocation10 + $0xe8] sm:$0xff]  ;;  %v73_v48 = vld [vmem:[#allocation9 + $0x8] sm:$0xff]  ;;  %v177_v62 = vld [vmem:[#allocation10 + $0x1b8] sm:$0xff] }
  0x48   :  { %815 = vmatprep.subr.mxu0 %v94_v26  ;;  %368 = vmatprep.subr.mxu1 %v159_v37  ;;  %v147_v49 = vld [vmem:[#allocation10 + $0xc8] sm:$0xff]  ;;  %v146_v51 = vld [vmem:[#allocation10 + $0xc0] sm:$0xff]  ;;  %v176_v63 = vld [vmem:[#allocation10 + $0x1b0] sm:$0xff] }
  0x49   :  { %816 = vmatpush3.msra.mxu0 %v78_v28  ;;  %369 = vmatpush1.msra.mxu1 %v158_v39  ;;  %v143_v53 = vld [vmem:[#allocation10 + $0xa8] sm:$0xff]  ;;  %v142_v57 = vld [vmem:[#allocation10 + $0xa0] sm:$0xff]  ;;  %v173_v0 = vld [vmem:[#allocation10 + $0x198] sm:$0xff] }
  0x4a   :  { %817 = vmatprep.subr.mxu0 %v93_v30  ;;  %370 = vmatprep.subr.mxu1 %v155_v41  ;;  %v258_v54 = vld [vmem:[#allocation4] sm:$0xff]  ;;  %v172_v1 = vld [vmem:[#allocation10 + $0x190] sm:$0xff]  ;;  %v169_v2 = vld [vmem:[#allocation10 + $0x178] sm:$0xff] }
  0x4b   :  { %818 = vmatpush3.msra.mxu0 %v77_v32  ;;  %371 = vmatpush1.msra.mxu1 %v154_v43  ;;  %v139_v59 = vld [vmem:[#allocation10 + $0x88] sm:$0xff]  ;;  %v138_v61 = vld [vmem:[#allocation10 + $0x80] sm:$0xff]  ;;  %v168_v3 = vld [vmem:[#allocation10 + $0x170] sm:$0xff] }
  0x4c   :  { %819 = vmatprep.subr.mxu0 %v92_v34  ;;  %372 = vmatprep.subr.mxu1 %v151_v45  ;;  %v165_v4 = vld [vmem:[#allocation10 + $0x158] sm:$0xff]  ;;  %v164_v5 = vld [vmem:[#allocation10 + $0x150] sm:$0xff]  ;;  %v135_v18 = vld [vmem:[#allocation10 + $0x68] sm:$0xff] }
  0x4d   :  { %820 = vmatpush3.msra.mxu0 %v76_v36  ;;  %373 = vmatpush1.msra.mxu1 %v150_v47  ;;  %v161_v6 = vld [vmem:[#allocation10 + $0x138] sm:$0xff]  ;;  %v160_v7 = vld [vmem:[#allocation10 + $0x130] sm:$0xff]  ;;  %v134_v20 = vld [vmem:[#allocation10 + $0x60] sm:$0xff]  ;;  %v1050_v36 = vmov 0.0  }
  0x4e   :  { %821 = vmatprep.subr.mxu0 %v91_v38  ;;  %374 = vmatprep.subr.mxu1 %v147_v49  ;;  %v157_v8 = vld [vmem:[#allocation10 + $0x118] sm:$0xff]  ;;  %v156_v9 = vld [vmem:[#allocation10 + $0x110] sm:$0xff]  ;;  %v131_v22 = vld [vmem:[#allocation10 + $0x48] sm:$0xff] }
  0x4f   :  { %822 = vmatpush3.msra.mxu0 %v75_v40  ;;  %375 = vmatpush1.msra.mxu1 %v146_v51  ;;  %v153_v10 = vld [vmem:[#allocation10 + $0xf8] sm:$0xff]  ;;  %v152_v11 = vld [vmem:[#allocation10 + $0xf0] sm:$0xff]  ;;  %v130_v24 = vld [vmem:[#allocation10 + $0x40] sm:$0xff] }
  0x50   :  { %823 = vmatprep.subr.mxu0 %v90_v42  ;;  %376 = vmatprep.subr.mxu1 %v143_v53  ;;  %v149_v12 = vld [vmem:[#allocation10 + $0xd8] sm:$0xff]  ;;  %v148_v13 = vld [vmem:[#allocation10 + $0xd0] sm:$0xff]  ;;  %v127_v26 = vld [vmem:[#allocation10 + $0x28] sm:$0xff] }
  0x51   :  { %824 = vmatpush3.msra.mxu0 %v74_v44  ;;  %377 = vmatpush1.msra.mxu1 %v142_v57  ;;  %v145_v14 = vld [vmem:[#allocation10 + $0xb8] sm:$0xff]  ;;  %v144_v15 = vld [vmem:[#allocation10 + $0xb0] sm:$0xff]  ;;  %v126_v28 = vld [vmem:[#allocation10 + $0x20] sm:$0xff] }
  0x52   :  { %825 = vmatprep.subr.mxu0 %v89_v46  ;;  %378 = vmatprep.subr.mxu1 %v139_v59  ;;  %v141_v16 = vld [vmem:[#allocation10 + $0x98] sm:$0xff]  ;;  %v140_v17 = vld [vmem:[#allocation10 + $0x90] sm:$0xff]  ;;  %v123_v30 = vld [vmem:[#allocation10 + $0x8] sm:$0xff] }
  0x53   :  { %826 = vmatpush3.msra.mxu0 %v73_v48  ;;  %379 = vmatpush1.msra.mxu1 %v138_v61  ;;  %v137_v19 = vld [vmem:[#allocation10 + $0x78] sm:$0xff]  ;;  %v136_v21 = vld [vmem:[#allocation10 + $0x70] sm:$0xff]  ;;  %v122_v32 = vld [vmem:[#allocation10] sm:$0xff] }
  0x54   :  { %827 = vmatprep.subr.mxu0 %v88_v50  ;;  %380 = vmatprep.subr.mxu1 %v135_v18  ;;  %v133_v23 = vld [vmem:[#allocation10 + $0x58] sm:$0xff]  ;;  %v132_v25 = vld [vmem:[#allocation10 + $0x50] sm:$0xff]  ;;  %v247_v34 = vld [vmem:[#allocation10 + $0x3e8] sm:$0xff] }
  0x55   :  { %828 = vmatpush3.msra.mxu0 %v72_v52  ;;  %381 = vmatpush1.msra.mxu1 %v134_v20  ;;  %v129_v27 = vld [vmem:[#allocation10 + $0x38] sm:$0xff]  ;;  %v128_v29 = vld [vmem:[#allocation10 + $0x30] sm:$0xff]  ;;  %v246_v44 = vld [vmem:[#allocation10 + $0x3e0] sm:$0xff] }
  0x56   :  { %329 = vmatmul.mubr.f32.vlgmr.msra.gmra.mxu0 %v258_v54  ;;  %427 = vmatprep.subr.mxu0 %v185_v55  ;;  %v125_v31 = vld [vmem:[#allocation10 + $0x18] sm:$0xff]  ;;  %v124_v33 = vld [vmem:[#allocation10 + $0x10] sm:$0xff]  ;;  %v243_v46 = vld [vmem:[#allocation10 + $0x3c8] sm:$0xff] }
  0x57   :  { %428 = vmatpush1.msra.mxu0 %v184_v56  ;;  %382 = vmatprep.subr.mxu1 %v131_v22  ;;  %v249_v35 = vld [vmem:[#allocation10 + $0x3f8] sm:$0xff]  ;;  %v256_v37 = vld [vmem:[#allocation7] sm:$0x3]  ;;  %v242_v48 = vld [vmem:[#allocation10 + $0x3c0] sm:$0xff] }
  0x58   :  { %429 = vmatprep.subr.mxu0 %v181_v58  ;;  %383 = vmatpush1.msra.mxu1 %v130_v24  ;;  %257 = vst [vmem:[#allocation2] sm:$0x3] %v256_v37  ;;  %v792_v39 = vld [vmem:[#allocation9 + $0x180] ss:$0 sm:$0xff]  ;;  %v248_v45 = vld [vmem:[#allocation10 + $0x3f0] sm:$0xff]  ;;  %v239_v50 = vld [vmem:[#allocation10 + $0x3a8] sm:$0xff] }
  0x59   :  { %430 = vmatpush1.msra.mxu0 %v180_v60  ;;  %384 = vmatprep.subr.mxu1 %v127_v26  ;;  %v245_v47 = vld [vmem:[#allocation10 + $0x3d8] sm:$0xff]  ;;  %v244_v49 = vld [vmem:[#allocation10 + $0x3d0] sm:$0xff]  ;;  %v238_v52 = vld [vmem:[#allocation10 + $0x3a0] sm:$0xff] }
  0x5a   :  { %431 = vmatprep.subr.mxu0 %v177_v62  ;;  %385 = vmatpush1.msra.mxu1 %v126_v28  ;;  %v241_v51 = vld [vmem:[#allocation10 + $0x3b8] sm:$0xff]  ;;  %v240_v53 = vld [vmem:[#allocation10 + $0x3b0] sm:$0xff]  ;;  %v235_v54 = vld [vmem:[#allocation10 + $0x388] sm:$0xff] }
  0x5b   :  { %432 = vmatpush1.msra.mxu0 %v176_v63  ;;  %386 = vmatprep.subr.mxu1 %v123_v30  ;;  %v237_v55 = vld [vmem:[#allocation10 + $0x398] sm:$0xff]  ;;  %v234_v56 = vld [vmem:[#allocation10 + $0x380] sm:$0xff]  ;;  %v236_v57 = vld [vmem:[#allocation10 + $0x390] sm:$0xff] }
  0x5c   :  { %433 = vmatprep.subr.mxu0 %v173_v0  ;;  %387 = vmatpush1.msra.mxu1 %v122_v32  ;;  %v231_v58 = vld [vmem:[#allocation10 + $0x368] sm:$0xff]  ;;  %v233_v59 = vld [vmem:[#allocation10 + $0x378] sm:$0xff]  ;;  %v230_v60 = vld [vmem:[#allocation10 + $0x360] sm:$0xff] }
  0x5d   :  { %434 = vmatpush1.msra.mxu0 %v172_v1  ;;  %420 = vmatprep.mubr.f32.mxu1 %v1050_v36  ;;  %v232_v61 = vld [vmem:[#allocation10 + $0x370] sm:$0xff]  ;;  %v227_v62 = vld [vmem:[#allocation10 + $0x348] sm:$0xff]  ;;  %v229_v63 = vld [vmem:[#allocation10 + $0x358] sm:$0xff] }
  0x5e   :  { %435 = vmatprep.subr.mxu0 %v169_v2  ;;  %491 = vmatprep.mubr.f32.mxu0 %v1050_v36  ;;  %v226_v0 = vld [vmem:[#allocation10 + $0x340] sm:$0xff]  ;;  %v228_v1 = vld [vmem:[#allocation10 + $0x350] sm:$0xff]  ;;  %v223_v2 = vld [vmem:[#allocation10 + $0x328] sm:$0xff] }
  0x5f   :  { %436 = vmatpush1.msra.mxu0 %v168_v3  ;;  %500 = vmatprep.subr.mxu1 %v247_v34  ;;  %v225_v3 = vld [vmem:[#allocation10 + $0x338] sm:$0xff]  ;;  %v207_v18 = vld [vmem:[#allocation10 + $0x2a8] sm:$0xff]  ;;  %v206_v20 = vld [vmem:[#allocation10 + $0x2a0] sm:$0xff] }
  0x60   :  { %437 = vmatprep.subr.mxu0 %v165_v4  ;;  %v222_v4 = vld [vmem:[#allocation10 + $0x320] sm:$0xff]  ;;  %v203_v22 = vld [vmem:[#allocation10 + $0x288] sm:$0xff] }
  0x61   :  { %438 = vmatpush1.msra.mxu0 %v164_v5  ;;  %v224_v5 = vld [vmem:[#allocation10 + $0x330] sm:$0xff]  ;;  %v202_v24 = vld [vmem:[#allocation10 + $0x280] sm:$0xff]  ;;  %v199_v26 = vld [vmem:[#allocation10 + $0x268] sm:$0xff] }
  0x62   :  { %439 = vmatprep.subr.mxu0 %v161_v6  ;;  %v219_v6 = vld [vmem:[#allocation10 + $0x308] sm:$0xff]  ;;  %v198_v28 = vld [vmem:[#allocation10 + $0x260] sm:$0xff] }
  0x63   :  { %440 = vmatpush1.msra.mxu0 %v160_v7  ;;  %v221_v7 = vld [vmem:[#allocation10 + $0x318] sm:$0xff]  ;;  %v195_v30 = vld [vmem:[#allocation10 + $0x248] sm:$0xff]  ;;  %v194_v32 = vld [vmem:[#allocation10 + $0x240] sm:$0xff] }
  0x64   :  { %441 = vmatprep.subr.mxu0 %v157_v8  ;;  %v218_v8 = vld [vmem:[#allocation10 + $0x300] sm:$0xff]  ;;  %v191_v34 = vld [vmem:[#allocation10 + $0x228] sm:$0xff] }
  0x65   :  { %442 = vmatpush1.msra.mxu0 %v156_v9  ;;  %v220_v9 = vld [vmem:[#allocation10 + $0x310] sm:$0xff]  ;;  %v190_v37 = vld [vmem:[#allocation10 + $0x220] sm:$0xff] }
  0x66   :  { %443 = vmatprep.subr.mxu0 %v153_v10  ;;  %v215_v10 = vld [vmem:[#allocation10 + $0x2e8] sm:$0xff] }
  0x67   :  { %444 = vmatpush1.msra.mxu0 %v152_v11  ;;  %v217_v11 = vld [vmem:[#allocation10 + $0x2f8] sm:$0xff] }
  0x68   :  { %445 = vmatprep.subr.mxu0 %v149_v12  ;;  %v214_v12 = vld [vmem:[#allocation10 + $0x2e0] sm:$0xff] }
  0x69   :  { %446 = vmatpush1.msra.mxu0 %v148_v13  ;;  %v216_v13 = vld [vmem:[#allocation10 + $0x2f0] sm:$0xff] }
  0x6a   :  { %447 = vmatprep.subr.mxu0 %v145_v14  ;;  %v211_v14 = vld [vmem:[#allocation10 + $0x2c8] sm:$0xff] }
  0x6b   :  { %448 = vmatpush1.msra.mxu0 %v144_v15  ;;  %v213_v15 = vld [vmem:[#allocation10 + $0x2d8] sm:$0xff] }
  0x6c   :  { %449 = vmatprep.subr.mxu0 %v141_v16  ;;  %v210_v16 = vld [vmem:[#allocation10 + $0x2c0] sm:$0xff] }
  0x6d   :  { %450 = vmatpush1.msra.mxu0 %v140_v17  ;;  %v212_v17 = vld [vmem:[#allocation10 + $0x2d0] sm:$0xff] }
  0x6e   :  { %451 = vmatprep.subr.mxu0 %v137_v19  ;;  %v209_v19 = vld [vmem:[#allocation10 + $0x2b8] sm:$0xff] }
  0x6f   :  { %452 = vmatpush1.msra.mxu0 %v136_v21  ;;  %v208_v21 = vld [vmem:[#allocation10 + $0x2b0] sm:$0xff] }
  0x70   :  { %453 = vmatprep.subr.mxu0 %v133_v23  ;;  %v205_v23 = vld [vmem:[#allocation10 + $0x298] sm:$0xff] }
  0x71   :  { %454 = vmatpush1.msra.mxu0 %v132_v25  ;;  %v204_v25 = vld [vmem:[#allocation10 + $0x290] sm:$0xff] }
  0x72   :  { %455 = vmatprep.subr.mxu0 %v129_v27  ;;  %v201_v27 = vld [vmem:[#allocation10 + $0x278] sm:$0xff] }
  0x73   :  { %456 = vmatpush1.msra.mxu0 %v128_v29  ;;  %v200_v29 = vld [vmem:[#allocation10 + $0x270] sm:$0xff] }
  0x74   :  { %457 = vmatprep.subr.mxu0 %v125_v31  ;;  %v197_v31 = vld [vmem:[#allocation10 + $0x258] sm:$0xff] }
  0x75   :  { %458 = vmatpush1.msra.mxu0 %v124_v33  ;;  %v196_v33 = vld [vmem:[#allocation10 + $0x250] sm:$0xff] }
  0x76   :  { %571 = vmatprep.subr.mxu0 %v249_v35  ;;  %v193_v35 = vld [vmem:[#allocation10 + $0x238] sm:$0xff] }
 0x116   :  { %v829_v38 = vpop.f32.mrf.mxu0 }
 0x118   :  { %v830_v40 = vpop.f32.mrf.mxu0 }
 0x119   :  { %v831_v41 = vadd.f32 %v830_v40, %v829_v38  ;;  %v192_v38 = vld [vmem:[#allocation10 + $0x230] sm:$0xff]  ;;  %v189_v40 = vld [vmem:[#allocation10 + $0x218] sm:$0xff] }
 0x11b   :  { %v331_v42 = vadd.f32 %v831_v41, %v792_v39  ;;  %v187_v39 = vld [vmem:[#allocation10 + $0x208] sm:$0xff]  ;;  %v186_v41 = vld [vmem:[#allocation10 + $0x200] sm:$0xff] }
 0x11d   :  { %v334_v43 = vmax.f32 %v331_v42, 0.0  ;;  %v188_v42 = vld [vmem:[#allocation10 + $0x210] sm:$0xff] }
 0x11f   :  { %421 = vmatmul.mubr.f32.vlgmr.msra.gmra.mxu1 %v334_v43  ;;  %492 = vmatmul.mubr.f32.vlgmr.msra.gmra.mxu0 %v334_v43  ;;  %v498_v43 = vld [vmem:[#allocation2] sm:$0x1] }
 0x120   :  { %501 = vmatpush1.msra.mxu1 %v246_v44  ;;  %572 = vmatpush1.msra.mxu0 %v248_v45  ;;  %v119_v44 = vld [vmem:[#allocation9 + $0x178] sm:$0xff]  ;;  %v118_v45 = vld [vmem:[#allocation9 + $0x170] sm:$0xff] }
 0x121   :  { %502 = vmatprep.subr.mxu1 %v243_v46  ;;  %573 = vmatprep.subr.mxu0 %v245_v47  ;;  %v117_v46 = vld [vmem:[#allocation9 + $0x168] sm:$0xff]  ;;  %v116_v47 = vld [vmem:[#allocation9 + $0x160] sm:$0xff] }
 0x122   :  { %503 = vmatpush1.msra.mxu1 %v242_v48  ;;  %574 = vmatpush1.msra.mxu0 %v244_v49  ;;  %v115_v48 = vld [vmem:[#allocation9 + $0x158] sm:$0xff]  ;;  %v114_v49 = vld [vmem:[#allocation9 + $0x150] sm:$0xff] }
 0x123   :  { %504 = vmatprep.subr.mxu1 %v239_v50  ;;  %575 = vmatprep.subr.mxu0 %v241_v51  ;;  %v113_v50 = vld [vmem:[#allocation9 + $0x148] sm:$0xff]  ;;  %v112_v51 = vld [vmem:[#allocation9 + $0x140] sm:$0xff] }
 0x124   :  { %505 = vmatpush1.msra.mxu1 %v238_v52  ;;  %576 = vmatpush1.msra.mxu0 %v240_v53  ;;  %v111_v52 = vld [vmem:[#allocation9 + $0x138] sm:$0xff]  ;;  %v110_v53 = vld [vmem:[#allocation9 + $0x130] sm:$0xff] }
 0x125   :  { %506 = vmatprep.subr.mxu1 %v235_v54  ;;  %577 = vmatprep.subr.mxu0 %v237_v55  ;;  %v109_v54 = vld [vmem:[#allocation9 + $0x128] sm:$0xff]  ;;  %v108_v55 = vld [vmem:[#allocation9 + $0x120] sm:$0xff] }
 0x126   :  { %507 = vmatpush1.msra.mxu1 %v234_v56  ;;  %578 = vmatpush1.msra.mxu0 %v236_v57  ;;  %v107_v56 = vld [vmem:[#allocation9 + $0x118] sm:$0xff]  ;;  %v106_v57 = vld [vmem:[#allocation9 + $0x110] sm:$0xff] }
 0x127   :  { %508 = vmatprep.subr.mxu1 %v231_v58  ;;  %579 = vmatprep.subr.mxu0 %v233_v59  ;;  %v105_v58 = vld [vmem:[#allocation9 + $0x108] sm:$0xff]  ;;  %v104_v59 = vld [vmem:[#allocation9 + $0x100] sm:$0xff] }
 0x128   :  { %509 = vmatpush1.msra.mxu1 %v230_v60  ;;  %580 = vmatpush1.msra.mxu0 %v232_v61  ;;  %v336_v60 = vlaneseq }
 0x129   :  { %510 = vmatprep.subr.mxu1 %v227_v62  ;;  %581 = vmatprep.subr.mxu0 %v229_v63  ;;  %v251_v63 = vld [vmem:[#allocation10 + $0x400] ss:$8 sm:$0xf] }
 0x12a   :  { %511 = vmatpush1.msra.mxu1 %v226_v0  ;;  %582 = vmatpush1.msra.mxu0 %v228_v1  ;;  %v337_v61 = vshrl.u32 %v336_v60, 7 }
 0x12b   :  { %512 = vmatprep.subr.mxu1 %v223_v2  ;;  %583 = vmatprep.subr.mxu0 %v225_v3 }
 0x12c   :  { %513 = vmatpush1.msra.mxu1 %v222_v4  ;;  %584 = vmatpush1.msra.mxu0 %v224_v5  ;;  %v338_v62 = vsub.s32 0, %v337_v61  ;;  %v342_v0 = vsub.s32 1, %v337_v61 }
 0x12d   :  { %514 = vmatprep.subr.mxu1 %v219_v6  ;;  %585 = vmatprep.subr.mxu0 %v221_v7 }
 0x12e   :  { %515 = vmatpush1.msra.mxu1 %v218_v8  ;;  %586 = vmatpush1.msra.mxu0 %v220_v9  ;;  %v339_v2 = vrot.slane %v251_v63, %v338_v62  ;;  %v343_v3 = vrot.slane %v251_v63, %v342_v0 }
 0x12f   :  { %516 = vmatprep.subr.mxu1 %v215_v10  ;;  %587 = vmatprep.subr.mxu0 %v217_v11  ;;  %v350_v10 = vsub.s32 3, %v337_v61 }
 0x130   :  { %517 = vmatpush1.msra.mxu1 %v214_v12  ;;  %588 = vmatpush1.msra.mxu0 %v216_v13 }
 0x131   :  { %518 = vmatprep.subr.mxu1 %v211_v14  ;;  %589 = vmatprep.subr.mxu0 %v213_v15 }
 0x132   :  { %519 = vmatpush1.msra.mxu1 %v210_v16  ;;  %590 = vmatpush1.msra.mxu0 %v212_v17  ;;  %v351_v16 = vrot.slane %v251_v63, %v350_v10  ;;  %v346_v17 = vsub.s32 2, %v337_v61 }
 0x133   :  { %520 = vmatprep.subr.mxu1 %v207_v18  ;;  %591 = vmatprep.subr.mxu0 %v209_v19 }
 0x134   :  { %521 = vmatpush1.msra.mxu1 %v206_v20  ;;  %592 = vmatpush1.msra.mxu0 %v208_v21  ;;  %v347_v20 = vrot.slane %v251_v63, %v346_v17 }
 0x135   :  { %522 = vmatprep.subr.mxu1 %v203_v22  ;;  %593 = vmatprep.subr.mxu0 %v205_v23 }
 0x136   :  { %523 = vmatpush1.msra.mxu1 %v202_v24  ;;  %594 = vmatpush1.msra.mxu0 %v204_v25 }
 0x137   :  { %524 = vmatprep.subr.mxu1 %v199_v26  ;;  %595 = vmatprep.subr.mxu0 %v201_v27 }
 0x138   :  { %525 = vmatpush1.msra.mxu1 %v198_v28  ;;  %596 = vmatpush1.msra.mxu0 %v200_v29 }
 0x139   :  { %526 = vmatprep.subr.mxu1 %v195_v30  ;;  %597 = vmatprep.subr.mxu0 %v197_v31  ;;  %v499_v31 = vld [vmem:[#allocation2 + $0x1] sm:$0x1] }
 0x13a   :  { %527 = vmatpush1.msra.mxu1 %v194_v32  ;;  %598 = vmatpush1.msra.mxu0 %v196_v33 }
 0x13b   :  { %528 = vmatprep.subr.mxu1 %v191_v34  ;;  %599 = vmatprep.subr.mxu0 %v193_v35 }
 0x13c   :  { %529 = vmatpush1.msra.mxu1 %v190_v37  ;;  %600 = vmatpush1.msra.mxu0 %v192_v38 }
 0x13d   :  { %530 = vmatprep.subr.mxu1 %v187_v39  ;;  %601 = vmatprep.subr.mxu0 %v189_v40 }
 0x13e   :  { %531 = vmatpush1.msra.mxu1 %v186_v41  ;;  %564 = vmatprep.mubr.f32.mxu1 %v1050_v36 }
 0x13f   :  { %602 = vmatpush1.msra.mxu0 %v188_v42  ;;  %635 = vmatprep.mubr.f32.mxu0 %v1050_v36 }
 0x140   :  { %565 = vmatmul.mubr.f32.vlgmr.msra.gmra.mxu1 %v498_v43  ;;  %636 = vmatmul.mubr.f32.vlgmr.msra.gmra.mxu0 %v498_v43 }
 0x141   :  { %849 = vmatprep.subr.mxu1 %v1050_v36  ;;  %881 = vmatprep.mubr.msk.f32.mxu1 %vm1051_vm0, %v1050_v36 }
 0x142   :  { %850 = vmatpush3.msra.mxu1 %v119_v44 }
 0x143   :  { %851 = vmatprep.subr.mxu1 %v1050_v36 }
 0x144   :  { %852 = vmatpush3.msra.mxu1 %v118_v45 }
 0x145   :  { %853 = vmatprep.subr.mxu1 %v1050_v36 }
 0x146   :  { %854 = vmatpush3.msra.mxu1 %v117_v46 }
 0x147   :  { %855 = vmatprep.subr.mxu1 %v1050_v36 }
 0x148   :  { %856 = vmatpush3.msra.mxu1 %v116_v47 }
 0x149   :  { %857 = vmatprep.subr.mxu1 %v1050_v36 }
 0x14a   :  { %858 = vmatpush3.msra.mxu1 %v115_v48 }
 0x14b   :  { %859 = vmatprep.subr.mxu1 %v1050_v36 }
 0x14c   :  { %860 = vmatpush3.msra.mxu1 %v114_v49 }
 0x14d   :  { %861 = vmatprep.subr.mxu1 %v1050_v36 }
 0x14e   :  { %862 = vmatpush3.msra.mxu1 %v113_v50 }
 0x14f   :  { %863 = vmatprep.subr.mxu1 %v1050_v36 }
 0x150   :  { %864 = vmatpush3.msra.mxu1 %v112_v51 }
 0x151   :  { %865 = vmatprep.subr.mxu1 %v1050_v36 }
 0x152   :  { %866 = vmatpush3.msra.mxu1 %v111_v52 }
 0x153   :  { %867 = vmatprep.subr.mxu1 %v1050_v36 }
 0x154   :  { %868 = vmatpush3.msra.mxu1 %v110_v53 }
 0x155   :  { %869 = vmatprep.subr.mxu1 %v1050_v36 }
 0x156   :  { %870 = vmatpush3.msra.mxu1 %v109_v54 }
 0x157   :  { %871 = vmatprep.subr.mxu1 %v1050_v36 }
 0x158   :  { %872 = vmatpush3.msra.mxu1 %v108_v55 }
 0x159   :  { %873 = vmatprep.subr.mxu1 %v1050_v36 }
 0x15a   :  { %874 = vmatpush3.msra.mxu1 %v107_v56 }
 0x15b   :  { %875 = vmatprep.subr.mxu1 %v1050_v36 }
 0x15c   :  { %876 = vmatpush3.msra.mxu1 %v106_v57 }
 0x15d   :  { %877 = vmatprep.subr.mxu1 %v1050_v36 }
 0x15e   :  { %878 = vmatpush3.msra.mxu1 %v105_v58 }
 0x15f   :  { %879 = vmatprep.subr.mxu1 %v1050_v36 }
 0x160   :  { %880 = vmatpush3.msra.mxu1 %v104_v59 }
 0x1df   :  { %v422_v1 = vpop.f32.mrf.mxu1  ;;  %v493_v6 = vpop.f32.mrf.mxu0 }
 0x1e0   :  { %v423_v5 = vadd.f32 %v422_v1, %v339_v2  ;;  %v494_v22 = vadd.f32 %v493_v6, %v347_v20 }
 0x1e1   :  { %v424_v4 = vpop.f32.mrf.mxu1  ;;  %v495_v12 = vpop.f32.mrf.mxu0 }
 0x1e2   :  { %v425_v8 = vadd.f32 %v424_v4, %v343_v3  ;;  %v496_v19 = vadd.f32 %v495_v12, %v351_v16 }
 0x200   :  { %v566_v7 = vpop.f32.mrf.mxu1  ;;  %v637_v14 = vpop.f32.mrf.mxu0 }
 0x201   :  { %v642_v9 = vadd.f32 %v566_v7, %v423_v5  ;;  %v644_v25 = vadd.f32 %v637_v14, %v494_v22 }
 0x202   :  { %v568_v11 = vpop.f32.mrf.mxu1  ;;  %v639_v18 = vpop.f32.mrf.mxu0 }
 0x203   :  { %v793_v13 = vmul.f32 -1.442695, %v642_v9  ;;  %v643_v36 = vadd.f32 %v568_v11, %v425_v8  ;;  %v645_v21 = vadd.f32 %v639_v18, %v496_v19 }
 0x205   :  { %896 = vpow2.f32 %v793_v13  ;;  %v794_v15 = vmul.f32 -1.442695, %v643_v36  ;;  %v795_v23 = vmul.f32 -1.442695, %v645_v21 }
 0x207   :  { %898 = vpow2.f32 %v794_v15 }
 0x208   :  { %900 = vpow2.f32 %v795_v23 }
 0x212   :  { %v897_v24 = vpop.eup %896 }
 0x213   :  { %v649_v26 = vadd.f32 1.0, %v897_v24 }
 0x214   :  { %v899_v27 = vpop.eup %898 }
 0x215   :  { %902 = vrcp.f32 %v649_v26  ;;  %v655_v28 = vadd.f32 1.0, %v899_v27  ;;  %v901_v29 = vpop.eup %900 }
 0x216   :  { %904 = vtanh.f32 %v644_v25  ;;  %v662_v34 = vadd.f32 1.0, %v901_v29 }
 0x217   :  { %906 = vrcp.f32 %v655_v28 }
 0x218   :  { %908 = vrcp.f32 %v662_v34 }
 0x222   :  { %v903_v30 = vpop.eup %902 }
 0x223   :  { %v905_v32 = vpop.eup %904 }
 0x224   :  { %v907_v33 = vpop.eup %906  ;;  %v666_v35 = vmul.f32 %v905_v32, %v903_v30 }
 0x225   :  { %v665_v37 = vmul.f32 %v907_v33, %v499_v31  ;;  %v909_v39 = vpop.eup %908 }
 0x227   :  { %v667_v38 = vadd.f32 %v666_v35, %v665_v37 }
 0x229   :  { %910 = vtanh.f32 %v667_v38  ;;  %679 = vst [vmem:[#allocation2 + $0x1] sm:$0x1] %v667_v38  ;;  %760 = vst [vmem:[#allocation13 + $0x1] sm:$0x1] %v667_v38 }
 0x236   :  { %v911_v40 = vpop.eup %910 }
 0x237   :  { %v669_v41 = vmul.f32 %v911_v40, %v909_v39 }
 0x239   :  { %678 = vst [vmem:[#allocation2] sm:$0x1] %v669_v41  ;;  %670 = vst [vmem:[#allocation3] sm:$0x1] %v669_v41 }
 0x23a   :  { %671 = vst [vmem:[#allocation3 + $0x1] sm:$0x1] %v669_v41  ;;  %672 = vst [vmem:[#allocation3 + $0x2] sm:$0x1] %v669_v41 }
 0x23b   :  { %673 = vst [vmem:[#allocation3 + $0x3] sm:$0x1] %v669_v41  ;;  %674 = vst [vmem:[#allocation3 + $0x4] sm:$0x1] %v669_v41 }
 0x23c   :  { %675 = vst [vmem:[#allocation3 + $0x5] sm:$0x1] %v669_v41  ;;  %676 = vst [vmem:[#allocation3 + $0x6] sm:$0x1] %v669_v41 }
 0x23d   :  { %677 = vst [vmem:[#allocation3 + $0x7] sm:$0x1] %v669_v41  ;;  %759 = vst [vmem:[#allocation13] sm:$0x1] %v669_v41 }
 0x244   :  { %v680_v42 = vld [vmem:[#allocation3] sm:$0xff] }
 0x245   :  { %882 = vmatmul.mubr.f32.vlgmr.msra.gmra.mxu1 %v680_v42 }
 0x246   :  { %1003 = shalt.err (!%p1000_p10)
}
 0x247   :  { %780 = dma.vmem_to_hbm [thread:$0]  %s778_s3, 32, %s1128_s5, [#allocation14]   ;;  %v796_v43 = vld [vmem:[#allocation9 + $0x181] ss:$0 sm:$0xff] }
 0x248   :  { %s1053_s18 = smov [#allocation12]  }
 0x249   :  { %s767_s19 = sshll.u32 %s1053_s18, 4  ;;  %s768_s19 = int_to_ptr.vmem [resolvable:$true] %s767_s19 }
 0x24a   :  { %s1012_s20 = scalar_lea.vmem %s768_s19, 128  ;;  %p1017_p12 = scmp.lt.s32.totalorder %s768_s19, %s768_s19 }
 0x24b   :  { %p1013_p11 = scmp.ne.s32.totalorder %s768_s19, %s1012_s20  ;;  %p1018_p13 = scmp.lt.s32.totalorder %s1012_s20, %s1012_s20 }
 0x24d   :  { %p1019_p0 = por %p1018_p13, %p1017_p12 }
 0x24f   :  { %p1020_p1 = pnand %p1019_p0, %p1013_p11 }
 0x305   :  { %v751_v44 = vpop.f32.mrf.mxu1 }
 0x306   :  { %v752_v45 = vadd.f32 %v796_v43, %v751_v44 }
 0x307   :  { %v883_v46 = vpop.f32.mrf.mxu1 }
 0x308   :  { %755 = vst [vmem:[#allocation12] sm:$0xff] %v752_v45 }
 0x309   :  { %1023 = shalt.err (!%p1020_p1)
}
 0x30a   :  { %770 = dma.vmem_to_hbm [thread:$0]  %s768_s19, 128, %s1127_s4, [#allocation6]  }
 0x30b   :  { %1038 = dma.done.wait [#allocation6], 128  }
 0x30c   :  { %1039 = vsyncadd [#allocation6], 4294967168 }
 0x30d   :  { %1040 = dma.done.wait [#allocation14], 32  }
 0x30e   :  { %1041 = vsyncadd [#allocation14], 4294967264 }
 0x30f   :  { %787 = vsyncpa [#allocation5], 1 }
 0x310   :  { %788 = vsyncpa [#allocation8], 1 }
 0x311   :  { %789 = vsyncpa [#allocation11], 1 }
 0x312   :  { %790 = vsyncpa [#allocation6], 1 }
 0x313   :  { %791 = vsyncpa [#allocation14], 1 }

</bundles_post_ra>
